<compile_context>
chip_gen: v7x
topology: tpu7x:2x2x1
jax: 0.10.0
libtpu: 0.0.40
codegen_flags: <defaults>
</compile_context>

<pallas_src>
import functools

import jax
import jax.numpy as jnp
from jax.experimental import pallas as pl
from jax.experimental.pallas import tpu as pltpu


def _scores(xT_ref, w1T_ref, b1_ref, w2T_ref, b2_ref):
    """s^T = W2^T @ relu(W1^T @ x^T + b1) + b2, shape (4, bt), f32."""
    # h^T: (H, bt).  MXU N-dim = batch (lane dense); f32 accumulation.
    h = jnp.dot(w1T_ref[...], xT_ref[...],
                preferred_element_type=jnp.float32) + b1_ref[...]
    h = jnp.maximum(h, 0.0)
    # s^T: (4, bt)
    return jnp.dot(w2T_ref[...], h,
                   preferred_element_type=jnp.float32) + b2_ref[...]


def policy_single_tile_kernel(xT_ref, w1T_ref, b1_ref, w2T_ref, b2_ref,
                              out_ref, *, batch):
    """Fast path: whole (padded) batch in one tile; direct dim=0 softmax."""
    s = _scores(xT_ref, w1T_ref, b1_ref, w2T_ref, b2_ref)
    col = jax.lax.broadcasted_iota(jnp.int32, s.shape, 1)
    valid = col < batch                       # padded lane columns are ignored
    s_m = jnp.where(valid, s, -jnp.inf)
    m = jnp.max(s_m, axis=1, keepdims=True)
    p = jnp.where(valid, jnp.exp(s - m), 0.0)
    l = jnp.sum(p, axis=1, keepdims=True)
    inv_l = pl.reciprocal(l, approx=False)    # exact: columns sum to 1
    out_ref[...] = (p * inv_l).astype(out_ref.dtype)


def policy_multi_tile_kernel(xT_ref, w1T_ref, b1_ref, w2T_ref, b2_ref, out_ref,
                             *scratch, batch, block_b, use_stash):
    """Online dim=0 softmax across batch tiles.

    Grid = (phase, tile).
      phase 0: stream x tiles; compute s; (optionally) stash s in VMEM;
               accumulate running per-action max m and sum-of-exp l.
      phase 1: normalize — either from the VMEM stash (use_stash=True, no x
               re-read, no matmul recompute) or by recomputing s (fallback).
    """
    if use_stash:
        stash_ref, m_ref, l_ref = scratch
    else:
        m_ref, l_ref = scratch

    phase = pl.program_id(0)
    tile = pl.program_id(1)

    @pl.when(phase == 0)
    def _stream():
        @pl.when(tile == 0)
        def _init():
            m_ref[...] = jnp.full_like(m_ref, -jnp.inf)
            l_ref[...] = jnp.zeros_like(l_ref)

        s = _scores(xT_ref, w1T_ref, b1_ref, w2T_ref, b2_ref)
        if use_stash:
            stash_ref[tile, :, :] = s

        # Padded lane columns must not contribute to the softmax statistics.
        col = tile * block_b + jax.lax.broadcasted_iota(jnp.int32, s.shape, 1)
        valid = col < batch
        s_m = jnp.where(valid, s, -jnp.inf)
        m_new = jnp.maximum(m_ref[...], jnp.max(s_m, axis=1, keepdims=True))
        alpha = jnp.exp(m_ref[...] - m_new)      # rescale previous partial sum
        p = jnp.where(valid, jnp.exp(s - m_new), 0.0)
        l_ref[...] = alpha * l_ref[...] + jnp.sum(p, axis=1, keepdims=True)
        m_ref[...] = m_new

    @pl.when(phase == 1)
    def _normalize():
        if use_stash:
            s = stash_ref[tile, :, :]
        else:
            s = _scores(xT_ref, w1T_ref, b1_ref, w2T_ref, b2_ref)
        inv_l = pl.reciprocal(l_ref[...], approx=False)
        # Padded columns hold junk; the wrapper slices them off before returning.
        out_ref[...] = (jnp.exp(s - m_ref[...]) * inv_l).astype(out_ref.dtype)


def policy_forward(x, w1T, b1, w2T, b2, *,
                   block_b=128 * 1024,
                   use_bf16=False,
                   out_dtype=jnp.float32,
                   stash_budget_bytes=16 * 1024 * 1024,
                   vmem_limit_bytes=48 * 1024 * 1024):
    """x: (B, 8) -> (B, 4) action probabilities with softmax over dim=0.

    Weights are supplied transposed for the lane-dense layout:
      w1T: (H, 8), b1: (H, 1), w2T: (4, H), b2: (4, 1).
    vmem_limit_bytes=48 MiB is sized for v7x (64 MiB VMEM); v5e/v6e (128 MiB)
    can raise it to ~96 MiB and a larger stash_budget_bytes for bigger batches.
    """
    B, in_dim = x.shape
    assert in_dim == 8
    H = w1T.shape[0]
    assert w1T.shape == (H, 8) and b1.shape == (H, 1)
    assert w2T.shape == (4, H) and b2.shape == (4, 1)

    x_dtype = jnp.bfloat16 if use_bf16 else x.dtype

    # Adaptive lane tile: keep the streaming VMEM footprint (double-buffered x,
    # double-buffered out, (H, bt) hidden temp, score/exp temps) around ~20 MB.
    itemsize = jnp.dtype(x_dtype).itemsize
    bytes_per_col = 2 * 8 * itemsize + 2 * 4 * 4 + 4 * H + 64
    stream_budget = 20 * 1024 * 1024
    bt_cap = max(128, (stream_budget // bytes_per_col) // 128 * 128)
    b_pad128 = ((B + 127) // 128) * 128
    bt = max(128, (min(block_b, bt_cap, b_pad128) // 128) * 128)
    n_tiles = -(-B // bt)
    B_pad = n_tiles * bt

    # Lane-dense (8, B_pad) input.  pad + transpose + (optional) bf16 cast fuse
    # into a single XLA copy before the kernel.
    # TODO(synk): allow callers to hand x in pre-transposed (8, B) to skip even
    # this one extra HBM pass.
    xT = jnp.pad(x, ((0, B_pad - B), (0, 0))).T.astype(x_dtype)
    w1 = w1T.astype(x_dtype)        # match x's dtype for the first MXU matmul
    b1f = b1.astype(jnp.float32)
    w2f = w2T.astype(jnp.float32)
    b2f = b2.astype(jnp.float32)

    compiler_params = pltpu.CompilerParams(
        # The dim=0 softmax spans batch tiles and both phases: sequential.
        dimension_semantics=("arbitrary",) if n_tiles == 1
        else ("arbitrary", "arbitrary"),
        vmem_limit_bytes=vmem_limit_bytes,
    )

    if n_tiles == 1:
        # Fast path: one grid step, direct softmax, no online stats, no phase 1.
        kernel = functools.partial(policy_single_tile_kernel, batch=B)
        outT = pl.pallas_call(
            kernel,
            out_shape=jax.ShapeDtypeStruct((4, B_pad), out_dtype),
            grid_spec=pltpu.PrefetchScalarGridSpec(
                num_scalar_prefetch=0,
                grid=(1,),
                in_specs=[
                    pl.BlockSpec((8, bt), lambda i: (0, 0)),
                    pl.BlockSpec((H, 8), lambda i: (0, 0)),
                    pl.BlockSpec((H, 1), lambda i: (0, 0)),
                    pl.BlockSpec((4, H), lambda i: (0, 0)),
                    pl.BlockSpec((4, 1), lambda i: (0, 0)),
                ],
                out_specs=pl.BlockSpec((4, bt), lambda i: (0, 0)),
            ),
            compiler_params=compiler_params,
        )(xT, w1, b1f, w2f, b2f)
        return outT[:, :B].T

    # Multi-tile path.  Prefer the single-streaming-pass (score-stash) scheme;
    # the (n_tiles, 4, bt) slab sublane-pads 4 -> 8 rows, i.e. 32 B / padded
    # sample of VMEM.  Fall back to recompute when it doesn't fit the budget.
    stash_bytes = n_tiles * 8 * bt * 4
    use_stash = stash_bytes <= stash_budget_bytes

    kernel = functools.partial(policy_multi_tile_kernel, batch=B, block_b=bt,
                               use_stash=use_stash)

    if use_stash:
        # Phase 1 never reads x: keep its block index pinned to the last
        # phase-0 block so no extra DMA is issued.
        x_index_map = lambda p, i: (0, i * (1 - p) + (n_tiles - 1) * p)
        scratch_shapes = [
            pltpu.VMEM((n_tiles, 4, bt), jnp.float32),   # score stash
            pltpu.VMEM((4, 1), jnp.float32),             # running max (dim=0)
            pltpu.VMEM((4, 1), jnp.float32),             # running sum of exp
        ]
    else:
        x_index_map = lambda p, i: (0, i)                # re-stream x in phase 1
        scratch_shapes = [
            pltpu.VMEM((4, 1), jnp.float32),
            pltpu.VMEM((4, 1), jnp.float32),
        ]

    outT = pl.pallas_call(
        kernel,
        out_shape=jax.ShapeDtypeStruct((4, B_pad), out_dtype),
        grid_spec=pltpu.PrefetchScalarGridSpec(
            num_scalar_prefetch=0,
            grid=(2, n_tiles),                           # (phase, batch tile)
            in_specs=[
                pl.BlockSpec((8, bt), x_index_map),      # x^T streamed
                pl.BlockSpec((H, 8), lambda p, i: (0, 0)),   # W1^T resident
                pl.BlockSpec((H, 1), lambda p, i: (0, 0)),   # b1 resident
                pl.BlockSpec((4, H), lambda p, i: (0, 0)),   # W2^T resident
                pl.BlockSpec((4, 1), lambda p, i: (0, 0)),   # b2 resident
            ],
            # Constant block during phase 0: unwritten output blocks are never
            # written back to HBM; phase 1 writes each block exactly once.
            out_specs=pl.BlockSpec((4, bt), lambda p, i: (0, i * p)),
            scratch_shapes=scratch_shapes,
        ),
        compiler_params=compiler_params,
    )(xT, w1, b1f, w2f, b2f)

    return outT[:, :B].T                                 # (B, 4), like the module


def init_params(hidden_size, key):
    """Synthetic init mimicking nn.Linear's U(-1/sqrt(fan_in), +...).
    Weights are stored transposed for the lane-dense kernel layout."""
    k1, k2, k3, k4 = jax.random.split(key, 4)
    bound1 = 1.0 / jnp.sqrt(8.0)
    bound2 = 1.0 / jnp.sqrt(float(hidden_size))
    w1T = jax.random.uniform(k1, (hidden_size, 8), jnp.float32, -bound1, bound1)
    b1 = jax.random.uniform(k2, (hidden_size, 1), jnp.float32, -bound1, bound1)
    w2T = jax.random.uniform(k3, (4, hidden_size), jnp.float32, -bound2, bound2)
    b2 = jax.random.uniform(k4, (4, 1), jnp.float32, -bound2, bound2)
    return w1T, b1, w2T, b2


def reference(x, w1T, b1, w2T, b2):
    h = jnp.maximum(x @ w1T.T + b1.T, 0.0)
    s = h @ w2T.T + b2.T
    return jax.nn.softmax(s, axis=0)                     # dim=0, as in the module


if __name__ == "__main__":
    key = jax.random.PRNGKey(0)
    k_x, k_p, k_x2 = jax.random.split(key, 3)

    H = 32
    w1T, b1, w2T, b2 = init_params(H, k_p)

    # Small shape consistent with the module: batch=2 LunarLander states (dim 8).
    # Exercises the n_tiles==1 fast path.
    B = 2
    x = jax.random.normal(k_x, (B, 8), jnp.float32)
    out = jax.block_until_ready(policy_forward(x, w1T, b1, w2T, b2))
    ref = reference(x, w1T, b1, w2T, b2)
    assert out.shape == (B, 4)
    assert jnp.allclose(out, ref, atol=1e-2, rtol=1e-2), \
        float(jnp.max(jnp.abs(out - ref)))
    assert jnp.allclose(jnp.sum(out, axis=0), jnp.ones((4,)), atol=1e-3)

    # Multi-tile single-streaming-pass (score-stash) path.  The tiny block_b
    # here only exercises the tiling logic at test scale; the production
    # default tile is ~128K lanes.
    B2 = 1000
    x2 = jax.random.normal(k_x2, (B2, 8), jnp.float32)
    ref2 = reference(x2, w1T, b1, w2T, b2)
    out2 = jax.block_until_ready(policy_forward(x2, w1T, b1, w2T, b2, block_b=256))
    assert out2.shape == (B2, 4)
    assert jnp.allclose(out2, ref2, atol=1e-2, rtol=1e-2), \
        float(jnp.max(jnp.abs(out2 - ref2)))

    # Multi-tile recompute fallback (stash budget forced to 0).
    out3 = jax.block_until_ready(
        policy_forward(x2, w1T, b1, w2T, b2, block_b=256, stash_budget_bytes=0))
    assert jnp.allclose(out3, ref2, atol=1e-2, rtol=1e-2), \
        float(jnp.max(jnp.abs(out3 - ref2)))

    # bf16 DMA path for x / W1 (cast fused with the wrapper transpose+pad);
    # f32 accumulation keeps the softmax sane.
    out4 = jax.block_until_ready(
        policy_forward(x2, w1T, b1, w2T, b2, block_b=256, use_bf16=True))
    assert jnp.allclose(out4, ref2, atol=5e-2, rtol=5e-2), \
        float(jnp.max(jnp.abs(out4 - ref2)))

    print("KERNEL_OK")
</pallas_src>

<mosaic_0001>
module attributes {stable_mosaic.version = 11 : i64} {
  func.func @policy_single_tile_kernel(%arg0: i32, %arg1: memref<8x128xf32, #tpu.memory_space<vmem>>, %arg2: memref<32x8xf32, #tpu.memory_space<vmem>>, %arg3: memref<32x1xf32, #tpu.memory_space<vmem>>, %arg4: memref<4x32xf32, #tpu.memory_space<vmem>>, %arg5: memref<4x1xf32, #tpu.memory_space<vmem>>, %arg6: memref<4x128xf32, #tpu.memory_space<vmem>>) attributes {dimension_semantics = [#tpu.dimension_semantics<arbitrary>], iteration_bounds = array<i64: 1>, scalar_prefetch = 0 : i64, scratch_operands = 0 : i64, tpu.core_type = #tpu.core_type<tc>, window_params = [{pipeline_mode = #tpu.pipeline_mode<synchronous>, transform_indices = @transform_0, window_bounds = array<i64: 8, 128>}, {pipeline_mode = #tpu.pipeline_mode<synchronous>, transform_indices = @transform_1, window_bounds = array<i64: 32, 8>}, {pipeline_mode = #tpu.pipeline_mode<synchronous>, transform_indices = @transform_2, window_bounds = array<i64: 32, 1>}, {pipeline_mode = #tpu.pipeline_mode<synchronous>, transform_indices = @transform_3, window_bounds = array<i64: 4, 32>}, {pipeline_mode = #tpu.pipeline_mode<synchronous>, transform_indices = @transform_4, window_bounds = array<i64: 4, 1>}, {pipeline_mode = #tpu.pipeline_mode<synchronous>, transform_indices = @transform_5, window_bounds = array<i64: 4, 128>}]} {
    %c0 = arith.constant 0 : index
    %c0_0 = arith.constant 0 : index
    %0 = vector.load %arg2[%c0, %c0_0] : memref<32x8xf32, #tpu.memory_space<vmem>>, vector<32x8xf32>
    %c0_1 = arith.constant 0 : index
    %c0_2 = arith.constant 0 : index
    %1 = vector.load %arg1[%c0_1, %c0_2] : memref<8x128xf32, #tpu.memory_space<vmem>>, vector<8x128xf32>
    %cst = arith.constant dense<0.000000e+00> : vector<32x128xf32>
    %2 = tpu.matmul %0, %1, %cst {dimension_numbers = #tpu.dot_dimension_numbers<[1], [0], [0], [1], [0, 0, 1, 1], [], []>} : vector<32x8xf32>, vector<8x128xf32>, vector<32x128xf32> -> vector<32x128xf32>
    %c0_3 = arith.constant 0 : index
    %c0_4 = arith.constant 0 : index
    %3 = vector.load %arg3[%c0_3, %c0_4] : memref<32x1xf32, #tpu.memory_space<vmem>>, vector<32x1xf32>
    %4 = vector.broadcast %3 : vector<32x1xf32> to vector<32x128xf32>
    %5 = arith.addf %2, %4 : vector<32x128xf32>
    %cst_5 = arith.constant 0.000000e+00 : f32
    %6 = vector.broadcast %cst_5 : f32 to vector<32x128xf32>
    %7 = arith.maximumf %5, %6 : vector<32x128xf32>
    %c0_6 = arith.constant 0 : index
    %c0_7 = arith.constant 0 : index
    %8 = vector.load %arg4[%c0_6, %c0_7] : memref<4x32xf32, #tpu.memory_space<vmem>>, vector<4x32xf32>
    %cst_8 = arith.constant dense<0.000000e+00> : vector<4x128xf32>
    %9 = tpu.matmul %8, %7, %cst_8 {dimension_numbers = #tpu.dot_dimension_numbers<[1], [0], [0], [1], [0, 0, 1, 1], [], []>} : vector<4x32xf32>, vector<32x128xf32>, vector<4x128xf32> -> vector<4x128xf32>
    %c0_9 = arith.constant 0 : index
    %c0_10 = arith.constant 0 : index
    %10 = vector.load %arg5[%c0_9, %c0_10] : memref<4x1xf32, #tpu.memory_space<vmem>>, vector<4x1xf32>
    %11 = vector.broadcast %10 : vector<4x1xf32> to vector<4x128xf32>
    %12 = arith.addf %9, %11 : vector<4x128xf32>
    %13 = tpu.iota {dimensions = array<i32: 1>} : vector<4x128xi32>
    %c2_i32 = arith.constant 2 : i32
    %14 = vector.broadcast %c2_i32 : i32 to vector<4x128xi32>
    %15 = arith.cmpi slt, %13, %14 : vector<4x128xi32>
    %cst_11 = arith.constant 0xFF800000 : f32
    %16 = vector.broadcast %cst_11 : f32 to vector<4x128xf32>
    %17 = arith.select %15, %12, %16 : vector<4x128xi1>, vector<4x128xf32>
    %cst_12 = arith.constant dense<0xFF800000> : vector<4xf32>
    %18 = vector.multi_reduction <maximumf>, %17, %cst_12 [1] : vector<4x128xf32> to vector<4xf32>
    %19 = vector.shape_cast %18 : vector<4xf32> to vector<4x1xf32>
    %20 = vector.broadcast %19 : vector<4x1xf32> to vector<4x128xf32>
    %21 = arith.subf %12, %20 : vector<4x128xf32>
    %22 = math.exp %21 : vector<4x128xf32>
    %cst_13 = arith.constant 0.000000e+00 : f32
    %23 = vector.broadcast %cst_13 : f32 to vector<4x128xf32>
    %24 = arith.select %15, %22, %23 : vector<4x128xi1>, vector<4x128xf32>
    %cst_14 = arith.constant dense<0.000000e+00> : vector<4xf32>
    %25 = vector.multi_reduction <add>, %24, %cst_14 [1] : vector<4x128xf32> to vector<4xf32>
    %26 = vector.shape_cast %25 : vector<4xf32> to vector<4x1xf32>
    %27 = tpu.reciprocal %26 : vector<4x1xf32> -> vector<4x1xf32>
    %28 = vector.broadcast %27 : vector<4x1xf32> to vector<4x128xf32>
    %29 = arith.mulf %24, %28 : vector<4x128xf32>
    %c0_15 = arith.constant 0 : index
    %c0_16 = arith.constant 0 : index
    %30 = vector.load %arg6[%c0_15, %c0_16] : memref<4x128xf32, #tpu.memory_space<vmem>>, vector<4x128xf32>
    tpu.vector_store %arg6[%c0_15, %c0_16], %29 {strides = array<i32>} : memref<4x128xf32, #tpu.memory_space<vmem>>, vector<4x128xf32>,
    return
  }
  func.func @transform_0(%arg0: i32) -> (i32, i32) {
    %c0_i32 = arith.constant 0 : i32
    %c0_i32_0 = arith.constant 0 : i32
    %c0_i32_1 = arith.constant 0 : i32
    return %c0_i32, %c0_i32_0 : i32, i32
  }
  func.func @transform_1(%arg0: i32) -> (i32, i32) {
    %c0_i32 = arith.constant 0 : i32
    %c0_i32_0 = arith.constant 0 : i32
    %c0_i32_1 = arith.constant 0 : i32
    return %c0_i32, %c0_i32_0 : i32, i32
  }
  func.func @transform_2(%arg0: i32) -> (i32, i32) {
    %c0_i32 = arith.constant 0 : i32
    %c0_i32_0 = arith.constant 0 : i32
    %c0_i32_1 = arith.constant 0 : i32
    return %c0_i32, %c0_i32_0 : i32, i32
  }
  func.func @transform_3(%arg0: i32) -> (i32, i32) {
    %c0_i32 = arith.constant 0 : i32
    %c0_i32_0 = arith.constant 0 : i32
    %c0_i32_1 = arith.constant 0 : i32
    return %c0_i32, %c0_i32_0 : i32, i32
  }
  func.func @transform_4(%arg0: i32) -> (i32, i32) {
    %c0_i32 = arith.constant 0 : i32
    %c0_i32_0 = arith.constant 0 : i32
    %c0_i32_1 = arith.constant 0 : i32
    return %c0_i32, %c0_i32_0 : i32, i32
  }
  func.func @transform_5(%arg0: i32) -> (i32, i32) {
    %c0_i32 = arith.constant 0 : i32
    %c0_i32_0 = arith.constant 0 : i32
    %c0_i32_1 = arith.constant 0 : i32
    return %c0_i32, %c0_i32_0 : i32, i32
  }
}

</mosaic_0001>

<bundles_post_ra>
// kernel: tpu_custom_call.1
= control target key start
LH: loop header
LB: loop body
LE: loop exit
PB: predicated region body
PF: predicated region fallthrough
CT: control target
= control target key end

     0   :  { %vm50_vm0 = vcmask 64512   ;;  %v340_v5 = vmov 0   ;;  %s424_s0 = inlined_call_operand.vmem [shape: f32[8,128], index: 0, kind: input, shape index: {}]   ;;  %s425_s1 = inlined_call_operand.vmem [shape: f32[32,8], index: 1, kind: input, shape index: {}]   ;;  %s426_s2 = inlined_call_operand.vmem [shape: f32[32,1], index: 2, kind: input, shape index: {}]   ;;  %s427_s3 = inlined_call_operand.vmem [shape: f32[4,32], index: 3, kind: input, shape index: {}]   ;;  %s428_s4 = inlined_call_operand.vmem [shape: f32[4,1], index: 4, kind: input, shape index: {}]   ;;  %s429_s5 = inlined_call_operand.hbm [shape: f32[4,128], index: 5, kind: output, shape index: {}]  }
   0x1   :  { %v25_v0 = vld [vmem:[%s424_s0] sm:$0xff]  ;;  %v22_v2 = vld [vmem:[%s425_s1 + $0x8] sm:$0xff]  ;;  %v23_v3 = vld [vmem:[%s425_s1 + $0x10] sm:$0xff]  ;;  %310 = vset.pattern.permute.xlu0 %v340_v5 }
   0x2   :  { %v21_v1 = vld [vmem:[%s425_s1] sm:$0xff]  ;;  %280 = vmatprep.subr.mxu0 %v25_v0  ;;  %v28_v6 = vld [vmem:[%s426_s2 + $0x10] sm:$0xff] }
   0x3   :  { %282 = vmatprep.mubr.msk.f32.mxu0 %vm50_vm0, %v21_v1  ;;  %v26_v4 = vld [vmem:[%s426_s2] sm:$0xff]  ;;  %281 = vmatpush3.msra.mxu0 %v25_v0 }
   0x4   :  { %283 = vmatmul.mubr.msk.f32.vlgmr.msra.gmra.mrb[0].mxu0 %vm50_vm0, %v22_v2  ;;  %32 = vperm.xlu0 %310, %v26_v4  }
   0x5   :  { %10 = vsyncpa [#allocation3], 0  ;;  %285 = vmatprep.mubr.msk.f32.mxu0 %vm50_vm0, %v23_v3  ;;  %v24_v7 = vld [vmem:[%s425_s1 + $0x18] sm:$0xff]  ;;  %v27_v8 = vld [vmem:[%s426_s2 + $0x8] sm:$0xff]  ;;  %311 = vset.pattern.permute.xlu1 %v340_v5  ;;  %v341_v11 = vmov 0.0|0.0   ;;  %vm342_vm1 = vmmov 0   ;;  %v233_v32 = vlaneseq }
   0x6   :  { %42 = vperm.xlu1 %311, %v28_v6   ;;  %v29_v9 = vld [vmem:[%s426_s2 + $0x18] sm:$0xff]  ;;  %v153_v10 = vld [vmem:[%s428_s4] sm:$0xf]  ;;  %299 = vmatprep.subr.bf16.mxu1 %v341_v11  ;;  %v343_v12 = vmov 0.0   ;;  %vm159_vm2 = vcmask 261120   ;;  %vm237_vm4 = vcmask 1043456  }
   0x7   :  { %296 = vmatprep.mubr.msk.f32.mxu1 %vm342_vm1, %v343_v12  ;;  %v152_v31 = vld [vmem:[%s427_s3] sm:$0xf]  ;;  %v234_v33 = vand.u32 127, %v233_v32  ;;  %s344_s3 = smov [#allocation2]  }
   0x8   :  { %286 = vmatmul.mubr.msk.f32.gmra.mrb[2].mxu0 %vm50_vm0, %v24_v7  ;;  %37 = vperm.xlu0 %310, %v27_v8   ;;  %s257_s4 = sshll.u32 %s344_s3, 4  ;;  %s258_s4 = int_to_ptr.vmem [resolvable:$true] %s257_s4 }
   0x9   :  { %vm235_vm3 = vcmp.lt.s32.totalorder %v234_v33, 2  ;;  %s316_s12 = scalar_lea.vmem %s258_s4, 64  ;;  %p321_p1 = scmp.lt.s32.totalorder %s258_s4, %s258_s4 }
   0xa   :  { %47 = vperm.xlu1 %311, %v29_v9   ;;  %p317_p0 = scmp.ne.s32.totalorder %s258_s4, %s316_s12  ;;  %p322_p2 = scmp.lt.s32.totalorder %s316_s12, %s316_s12 }
   0xc   :  { %156 = vperm.xlu0 %310, %v153_v10   ;;  %p323_p3 = por %p322_p2, %p321_p1 }
   0xe   :  { %p324_p4 = pnand %p323_p3, %p317_p0 }
  0x83   :  { %v33_v13 = vpop.permute.xlu0 %32 }
  0x85   :  { %v43_v14 = vpop.permute.xlu1 %42 }
  0x87   :  { %v38_v15 = vpop.permute.xlu0 %37 }
  0x89   :  { %v48_v21 = vpop.permute.xlu1 %47 }
  0x8b   :  { %v157_v34 = vpop.permute.xlu0 %156 }
  0xd7   :  { %v284_v16 = vpop.f32.mrb[0].mxu0 }
  0xd8   :  { %v135_v17 = vadd.f32 %v284_v16, %v38_v15  ;;  %v129_v18 = vpop.f32.mrb[1].mxu0 }
  0xd9   :  { %v130_v19 = vadd.f32 %v129_v18, %v33_v13 }
  0xda   :  { %v149_v20 = vmax.f32 %v135_v17, 0.0 }
  0xdb   :  { %v148_v22 = vmax.f32 %v130_v19, 0.0  ;;  %v287_v23 = vpop.f32.mrb[2].mxu0 }
  0xdc   :  { %v145_v24 = vadd.f32 %v287_v23, %v48_v21  ;;  %v139_v25 = vpop.f32.mrb[3].mxu0 }
  0xdd   :  { %v140_v26 = vadd.f32 %v139_v25, %v43_v14  ;;  %v300_v27 = vpack.c.bf16 %v149_v20, %v148_v22 }
  0xde   :  { %v151_v28 = vmax.f32 %v145_v24, 0.0 }
  0xdf   :  { %v150_v29 = vmax.f32 %v140_v26, 0.0  ;;  %301 = vmatpush3.bf16.msra.mxu1 %v300_v27 }
  0xe0   :  { %302 = vmatprep.subr.bf16.mxu1 %v341_v11 }
  0xe1   :  { %v303_v30 = vpack.c.bf16 %v151_v28, %v150_v29 }
  0xe3   :  { %304 = vmatpush3.bf16.msra.mxu1 %v303_v30 }
  0xe6   :  { %297 = vmatmul.mubr.msk.f32.vlgmr.msra.gmra.mrb[0].mxu1 %vm159_vm2, %v152_v31 }
 0x1b9   :  { %v229_v35 = vpop.f32.mrb[0].mxu1 }
 0x1ba   :  { %v230_v36 = vadd.f32 %v229_v35, %v157_v34  ;;  %v298_v37 = vpop.f32.mrb[1].mxu1 }
 0x1bc   :  { %v236_v38 = vsel %vm235_vm3, %v230_v36, -inf }
 0x1bd   :  { %v238_v39 = vsel %vm237_vm4, %v236_v38, -inf }
 0x1be   :  { %239 = vmax.xlane.f32.xlu1 %v238_v39 }
 0x24b   :  { %v240_v40 = vpop.xlane.xlu1 %239 }
 0x24c   :  { %v241_v41 = vsub.f32 %v230_v36, %v240_v40 }
 0x24e   :  { %v242_v42 = vmul.f32 1.442695, %v241_v41 }
 0x250   :  { %312 = vpow2.f32 %v242_v42 }
 0x25a   :  { %v313_v43 = vpop.eup %312 }
 0x25b   :  { %v244_v44 = vsel %vm235_vm3, %v313_v43, 0.0 }
 0x25c   :  { %v245_v45 = vsel %vm237_vm4, %v244_v44, 0.0 }
 0x25d   :  { %246 = vadd.xlane.f32.xlu0 %v245_v45 }
 0x2ea   :  { %v247_v46 = vpop.xlane.xlu0 %246 }
 0x2eb   :  { %314 = vrcp.f32 %v247_v46 }
 0x2f5   :  { %v315_v47 = vpop.eup %314 }
 0x2f6   :  { %v249_v48 = vmul.f32 %v315_v47, %v244_v44 }
 0x2f8   :  { %250 = vst [vmem:[#allocation2] sm:$0xf] %v249_v48 }
 0x2f9   :  { %327 = shalt.err (!%p324_p4)
}
 0x2fa   :  { %s328_s15 = scalar_lea.hbm %s429_s5, 64 }
 0x2fb   :  { %p329_p5 = scmp.ne.s32.totalorder %s429_s5, %s328_s15  ;;  %p332_p6 = scmp.lt.u32.totalorder %s328_s15, %s429_s5 }
 0x2fd   :  { %p334_p7 = pnand %p332_p6, %p329_p5 }
 0x2ff   :  { %337 = shalt.err (!%p334_p7)
}
 0x300   :  { %260 = dma.vmem_to_hbm [thread:$0]  %s258_s4, 64, %s429_s5, [#allocation3]  }
 0x301   :  { %338 = dma.done.wait [#allocation3], 64  }
 0x302   :  { %339 = vsyncadd [#allocation3], 4294967232 }
 0x303   :  { %264 = vsyncpa [#allocation3], 1 }

</bundles_post_ra>
